<compile_context>
chip_gen: v7x
topology: tpu7x:2x2x1
jax: 0.10.0
libtpu: 0.0.40
codegen_flags: <defaults>
</compile_context>

<pallas_src>
import functools
import math

import jax
import jax.numpy as jnp
from jax.experimental import pallas as pl
from jax.experimental.pallas import tpu as pltpu


# ----------------------------------------------------------------------------
# Parameter / buffer setup (plain JAX glue, identical math to the PyTorch init)
# ----------------------------------------------------------------------------
def make_positional_table(max_len: int, d_model: int, dtype=jnp.float32):
    position = jnp.arange(max_len, dtype=jnp.float32)[:, None]          # (L, 1)
    div_term = jnp.exp(
        jnp.arange(0, d_model, 2, dtype=jnp.float32)
        * (-math.log(10000.0) / d_model)
    )                                                                    # (D/2,)
    pe = jnp.zeros((max_len, d_model), dtype=jnp.float32)
    pe = pe.at[:, 0::2].set(jnp.sin(position * div_term))
    pe = pe.at[:, 1::2].set(jnp.cos(position * div_term))
    return pe.astype(dtype)                                              # (L, D)


# ----------------------------------------------------------------------------
# Pallas kernel: y = x + pe   (+ inverted dropout when training=True)
# Operates on lane-dense 2D tiles: x_ref, pe_ref, o_ref are (tS, N) with N=B*D.
# ----------------------------------------------------------------------------
def _pe_add_kernel(seed_ref, x_ref, pe_ref, o_ref, *, p, training, block_s, n):
    y = x_ref[...] + pe_ref[...]

    if training and p > 0.0:
        # Inverted dropout.  Portable counter-based RNG: murmur3 finalizer on
        # the element's global linear index mixed with the seed.  Works in
        # Mosaic and interpret mode (no TPU-only prng primitives).
        # TODO(synk): cannot bit-exactly reproduce torch's RNG stream; the
        # semantics (Bernoulli keep with prob 1-p, scale by 1/(1-p)) match.
        i = pl.program_id(0)
        row = jax.lax.broadcasted_iota(jnp.int32, y.shape, 0)
        col = jax.lax.broadcasted_iota(jnp.int32, y.shape, 1)
        # int32 wrap-around is fine: we only need a well-mixed counter.
        gidx = ((row + i * block_s) * n + col).astype(jnp.uint32)

        seed_u = seed_ref[0].astype(jnp.uint32)
        h = gidx ^ (seed_u * jnp.uint32(0x9E3779B9))
        h = h * jnp.uint32(0xCC9E2D51)
        h = h ^ (h >> 15)
        h = h * jnp.uint32(0x1B873593)
        h = h ^ (h >> 13)
        h = h * jnp.uint32(0xC2B2AE35)
        h = h ^ (h >> 16)

        # Keep with probability (1 - p): compare raw uint32 bits vs threshold.
        threshold = jnp.uint32(min(int(p * 4294967296.0), 4294967295))
        keep = h >= threshold
        scale = jnp.asarray(1.0 / (1.0 - p), dtype=y.dtype)
        y = jnp.where(keep, y * scale, jnp.zeros_like(y))

    o_ref[...] = y.astype(o_ref.dtype)


def _pick_block_s(S, row_bytes, target_bytes=2 * 1024 * 1024):
    """Largest multiple-of-8 row-tile whose block stays around ~2 MiB."""
    if S <= 8:
        return S
    bs = max(8, target_bytes // max(row_bytes, 1))
    bs = max(8, (bs // 8) * 8)
    return min(bs, S)


def positional_encoding(x, pe_table, *, p=0.1, training=False, seed=0,
                        block_s=None):
    """x: (S, B, D) float array. pe_table: (max_len, D). Returns (S, B, D)."""
    S, B, D = x.shape

    if training and p >= 1.0:
        # torch dropout with p=1 zeroes the whole tensor; avoid 1/(1-p) = inf.
        return jnp.zeros_like(x)

    pe = pe_table[:S, :].astype(x.dtype)               # (S, D) glue slice

    # Lane-dense presentation: last dim B*D (multiple of 128 for realistic
    # B, D) so stores are unmasked; also removes the in-kernel broadcast.
    N = B * D
    x2 = x.reshape(S, N)
    pe2 = jnp.tile(pe, (1, B))                         # pe2[s, b*D + d] = pe[s, d]

    if block_s is None:
        block_s = _pick_block_s(S, N * x2.dtype.itemsize)
    block_s = min(block_s, S)
    if block_s != S and block_s % 8 != 0:              # (8,128) tiling rule
        block_s = max(8, (block_s // 8) * 8)
        block_s = min(block_s, S)

    grid = (pl.cdiv(S, block_s),)
    seed_arr = jnp.asarray([seed], dtype=jnp.int32)

    kernel = functools.partial(
        _pe_add_kernel,
        p=float(p), training=bool(training), block_s=int(block_s), n=int(N))

    out2 = pl.pallas_call(
        kernel,
        out_shape=jax.ShapeDtypeStruct((S, N), x.dtype),
        grid_spec=pltpu.PrefetchScalarGridSpec(
            num_scalar_prefetch=1,                     # dropout seed lives in SMEM
            grid=grid,
            in_specs=[
                pl.BlockSpec((block_s, N), lambda i, seed: (i, 0)),   # x tile
                pl.BlockSpec((block_s, N), lambda i, seed: (i, 0)),   # pe tile
            ],
            out_specs=pl.BlockSpec((block_s, N), lambda i, seed: (i, 0)),
        ),
        compiler_params=pltpu.CompilerParams(
            # Elementwise over independent S-tiles: parallel lets v7x's two
            # TensorCores split the grid; no-op on v5e/v6e.
            dimension_semantics=("parallel",),
            # Small explicit limit keeps double-buffering alive on v7x (64 MiB
            # physical, 32 MiB scoped default) without recompiling blind.
            vmem_limit_bytes=32 * 1024 * 1024,
        ),
        # Note: could alias x->out (input_output_aliases) to halve HBM footprint;
        # omitted here to keep the wrapper donation-agnostic.
    )(seed_arr, x2, pe2)

    return out2.reshape(S, B, D)


# ----------------------------------------------------------------------------
# Test
# ----------------------------------------------------------------------------
if __name__ == "__main__":
    d_model = 32
    max_len = 64          # small synthetic max_len (module default is 5000)
    seq_len = 8
    batch = 2

    key = jax.random.PRNGKey(0)
    x = jax.random.normal(key, (seq_len, batch, d_model), dtype=jnp.float32)

    pe_table = make_positional_table(max_len, d_model)
    ref = x + pe_table[:seq_len][:, None, :]

    # Eval-mode forward (dropout is identity), matching module.eval() semantics.
    out = positional_encoding(x, pe_table, p=0.1, training=False)
    out = jax.block_until_ready(out)
    assert out.shape == (seq_len, batch, d_model)
    assert jnp.allclose(out, ref, atol=1e-6, rtol=1e-6), "mismatch vs reference"

    # Training-mode forward (inverted dropout): sanity-check semantics.
    p = 0.5
    out_tr = positional_encoding(x, pe_table, p=p, training=True, seed=1234)
    out_tr = jax.block_until_ready(out_tr)
    assert out_tr.shape == (seq_len, batch, d_model)
    assert bool(jnp.all(jnp.isfinite(out_tr)))
    dropped = out_tr == 0.0
    kept_ok = jnp.where(
        dropped, True,
        jnp.isclose(out_tr, ref / (1.0 - p), atol=1e-5, rtol=1e-5))
    assert bool(jnp.all(kept_ok)), "kept elements not scaled by 1/(1-p)"
    frac = float(jnp.mean(dropped.astype(jnp.float32)))
    assert 0.2 < frac < 0.8, f"drop fraction {frac} implausible for p={p}"

    print("KERNEL_OK")
</pallas_src>

<mosaic_0001>
module attributes {stable_mosaic.version = 11 : i64} {
  func.func @_pe_add_kernel(%arg0: i32, %arg1: memref<1xi32, #tpu.memory_space<smem>>, %arg2: memref<8x64xf32, #tpu.memory_space<vmem>>, %arg3: memref<8x64xf32, #tpu.memory_space<vmem>>, %arg4: memref<8x64xf32, #tpu.memory_space<vmem>>) attributes {dimension_semantics = [#tpu.dimension_semantics<parallel>], iteration_bounds = array<i64: 1>, scalar_prefetch = 1 : i64, scratch_operands = 0 : i64, tpu.core_type = #tpu.core_type<tc>, window_params = [{transform_indices = @transform_0, window_bounds = array<i64: 8, 64>}, {transform_indices = @transform_1, window_bounds = array<i64: 8, 64>}, {transform_indices = @transform_2, window_bounds = array<i64: 8, 64>}]} {
    %c0 = arith.constant 0 : index
    %c0_0 = arith.constant 0 : index
    %0 = vector.load %arg2[%c0, %c0_0] : memref<8x64xf32, #tpu.memory_space<vmem>>, vector<8x64xf32>
    %c0_1 = arith.constant 0 : index
    %c0_2 = arith.constant 0 : index
    %1 = vector.load %arg3[%c0_1, %c0_2] : memref<8x64xf32, #tpu.memory_space<vmem>>, vector<8x64xf32>
    %2 = arith.addf %0, %1 : vector<8x64xf32>
    %c0_3 = arith.constant 0 : index
    %c0_4 = arith.constant 0 : index
    %3 = vector.load %arg4[%c0_3, %c0_4] : memref<8x64xf32, #tpu.memory_space<vmem>>, vector<8x64xf32>
    tpu.vector_store %arg4[%c0_3, %c0_4], %2 {strides = array<i32>} : memref<8x64xf32, #tpu.memory_space<vmem>>, vector<8x64xf32>,
    return
  }
  func.func @transform_0(%arg0: i32, %arg1: memref<1xi32, #tpu.memory_space<smem>>) -> (i32, i32) {
    %c0_i32 = arith.constant 0 : i32
    %c0_i32_0 = arith.constant 0 : i32
    return %arg0, %c0_i32 : i32, i32
  }
  func.func @transform_1(%arg0: i32, %arg1: memref<1xi32, #tpu.memory_space<smem>>) -> (i32, i32) {
    %c0_i32 = arith.constant 0 : i32
    %c0_i32_0 = arith.constant 0 : i32
    return %arg0, %c0_i32 : i32, i32
  }
  func.func @transform_2(%arg0: i32, %arg1: memref<1xi32, #tpu.memory_space<smem>>) -> (i32, i32) {
    %c0_i32 = arith.constant 0 : i32
    %c0_i32_0 = arith.constant 0 : i32
    return %arg0, %c0_i32 : i32, i32
  }
}

</mosaic_0001>

<bundles_post_ra>
// kernel: tpu_custom_call.1
= control target key start
LH: loop header
LB: loop body
LE: loop exit
PB: predicated region body
PF: predicated region fallthrough
CT: control target
= control target key end

     0   :  { %9 = vsyncpa [#allocation5], 0  ;;  %s193_s0 = inlined_call_operand.<no memory space> [shape: s32[1], index: 0, kind: input, shape index: {}]   ;;  %s194_s1 = inlined_call_operand.hbm [shape: f32[8,64], index: 1, kind: input, shape index: {}]   ;;  %s195_s2 = inlined_call_operand.hbm [shape: f32[8,64], index: 2, kind: input, shape index: {}]   ;;  %s196_s3 = inlined_call_operand.hbm [shape: f32[8,64], index: 3, kind: output, shape index: {}]  }
   0x1   :  { %10 = vsyncpa [#allocation8], 0 }
   0x2   :  { %11 = vsyncpa [#allocation6], 0  ;;  %s134_s12 = smov [#allocation4]   ;;  %s135_s14 = smov [#allocation7]  }
   0x3   :  { %s18_s13 = sshll.u32 %s134_s12, 4  ;;  %s28_s15 = sshll.u32 %s135_s14, 4  ;;  %s19_s13 = int_to_ptr.vmem [resolvable:$true] %s18_s13  ;;  %s29_s15 = int_to_ptr.vmem [resolvable:$true] %s28_s15 }
   0x4   :  { %s62_s17 = scalar_lea.hbm %s194_s1, 128 }
   0x5   :  { %p63_p0 = scmp.ne.s32.totalorder %s194_s1, %s62_s17  ;;  %p66_p1 = scmp.lt.u32.totalorder %s62_s17, %s194_s1 }
   0x7   :  { %p68_p2 = pnand %p66_p1, %p63_p0 }
   0x9   :  { %71 = shalt.err (!%p68_p2)
}
   0xa   :  { %s72_s22 = scalar_lea.vmem %s19_s13, 128  ;;  %p77_p4 = scmp.lt.s32.totalorder %s19_s13, %s19_s13 }
   0xb   :  { %p73_p3 = scmp.ne.s32.totalorder %s19_s13, %s72_s22  ;;  %p78_p5 = scmp.lt.s32.totalorder %s72_s22, %s72_s22 }
   0xd   :  { %p79_p6 = por %p78_p5, %p77_p4 }
   0xf   :  { %p80_p7 = pnand %p79_p6, %p73_p3 }
  0x11   :  { %83 = shalt.err (!%p80_p7)
}
  0x12   :  { %21 = dma.hbm_to_vmem [thread:$0]  %s194_s1, 128, %s19_s13, [#allocation5]  }
  0x13   :  { %s84_s27 = scalar_lea.hbm %s195_s2, 128 }
  0x14   :  { %p85_p8 = scmp.ne.s32.totalorder %s195_s2, %s84_s27  ;;  %p88_p9 = scmp.lt.u32.totalorder %s84_s27, %s195_s2 }
  0x16   :  { %p90_p10 = pnand %p88_p9, %p85_p8 }
  0x18   :  { %93 = shalt.err (!%p90_p10)
}
  0x19   :  { %s94_s5 = scalar_lea.vmem %s29_s15, 128  ;;  %p99_p12 = scmp.lt.s32.totalorder %s29_s15, %s29_s15 }
  0x1a   :  { %p95_p11 = scmp.ne.s32.totalorder %s29_s15, %s94_s5  ;;  %p100_p13 = scmp.lt.s32.totalorder %s94_s5, %s94_s5 }
  0x1c   :  { %p101_p0 = por %p100_p13, %p99_p12 }
  0x1e   :  { %p102_p1 = pnand %p101_p0, %p95_p11 }
  0x20   :  { %105 = shalt.err (!%p102_p1)
}
  0x21   :  { %31 = dma.hbm_to_vmem [thread:$0]  %s195_s2, 128, %s29_s15, [#allocation8]  }
  0x22   :  { %128 = dma.done.wait [#allocation5], 128  }
  0x23   :  { %129 = vsyncadd [#allocation5], 4294967168 }
  0x24   :  { %130 = dma.done.wait [#allocation8], 128  }
  0x25   :  { %131 = vsyncadd [#allocation8], 4294967168  ;;  %s136_s7 = smov [#allocation9]   ;;  %v38_v0 = vld [vmem:[#allocation4] sm:$0xff]  ;;  %v39_v1 = vld [vmem:[#allocation7] sm:$0xff]  ;;  %vm41_vm0 = vcmask 523264  }
  0x26   :  { %s49_s8 = sshll.u32 %s136_s7, 4  ;;  %v40_v2 = vadd.f32 %v39_v1, %v38_v0  ;;  %s50_s8 = int_to_ptr.vmem [resolvable:$true] %s49_s8 }
  0x27   :  { %s106_s9 = scalar_lea.vmem %s50_s8, 128  ;;  %p111_p3 = scmp.lt.s32.totalorder %s50_s8, %s50_s8 }
  0x28   :  { %42 = vst.msk [vmem:[#allocation9] sm:$0xff] %vm41_vm0, %v40_v2  ;;  %p107_p2 = scmp.ne.s32.totalorder %s50_s8, %s106_s9  ;;  %p112_p4 = scmp.lt.s32.totalorder %s106_s9, %s106_s9 }
  0x2a   :  { %p113_p5 = por %p112_p4, %p111_p3 }
  0x2c   :  { %p114_p6 = pnand %p113_p5, %p107_p2 }
  0x2e   :  { %117 = shalt.err (!%p114_p6)
}
  0x2f   :  { %s118_s11 = scalar_lea.hbm %s196_s3, 128 }
  0x30   :  { %p119_p7 = scmp.ne.s32.totalorder %s196_s3, %s118_s11  ;;  %p122_p8 = scmp.lt.u32.totalorder %s118_s11, %s196_s3 }
  0x32   :  { %p124_p9 = pnand %p122_p8, %p119_p7 }
  0x34   :  { %127 = shalt.err (!%p124_p9)
}
  0x35   :  { %52 = dma.vmem_to_hbm [thread:$0]  %s50_s8, 128, %s196_s3, [#allocation6]  }
  0x36   :  { %132 = dma.done.wait [#allocation6], 128  }
  0x37   :  { %133 = vsyncadd [#allocation6], 4294967168 }
  0x38   :  { %56 = vsyncpa [#allocation5], 1 }
  0x39   :  { %57 = vsyncpa [#allocation8], 1 }
  0x3a   :  { %58 = vsyncpa [#allocation6], 1 }

</bundles_post_ra>
